<compile_context>
chip_gen: v7x
topology: tpu7x:2x2x1
jax: 0.10.0
libtpu: 0.0.40
codegen_flags: <defaults>
</compile_context>

<pallas_src>
import math

import jax
import jax.numpy as jnp
from jax.experimental import pallas as pl

# ---------------------------------------------------------------------------
# Problem sizes (small, consistent with Policy(state_dim, action_dim, ...))
# ---------------------------------------------------------------------------
BATCH = 8
STATE_DIM = 16
ACTION_DIM = 4
HIDDEN = 32
MAX_ACTION = 2.0
LANE = 128

_LOG_SQRT_2PI = 0.5 * math.log(2.0 * math.pi)
_LOG_2 = math.log(2.0)


def _round_up(x, m):
    return (x + m - 1) // m * m


# --- packed parameter slab layout: (PARAM_ROWS, 128) f32, all blocks lane-0 ---
R_W1 = 0                                   # rows 0:16   w1  (S, H)
R_B1 = _round_up(R_W1 + STATE_DIM, 8)      # row  16     b1  (1, H)
R_W2 = R_B1 + 8                            # rows 24:56  w2  (H, H)
R_B2 = R_W2 + HIDDEN                       # row  56     b2  (1, H)
R_W3M = _round_up(R_B2 + 8, 8)             # rows 64:96  w3_mu     (H, 128) zero-padded
R_W3S = R_W3M + HIDDEN                     # rows 96:128 w3_logstd (H, 128) zero-padded
R_B3M = R_W3S + HIDDEN                     # row  128    b3_mu     (1, 128) zero-padded
R_B3S = R_B3M + 8                          # row  136    b3_logstd (1, 128) zero-padded
PARAM_ROWS = R_B3S + 8                     # 144


def policy_kernel(data_ref, p_ref, out_ref):
    B, S, H, A = BATCH, STATE_DIM, HIDDEN, ACTION_DIM

    # --- carve packed inputs (static, lane-0-aligned slices) ---
    x = data_ref[0:B, 0:S]                       # (B, S)
    eps = data_ref[B:2 * B, :]                   # (B, 128); lanes >= A are zero

    w1 = p_ref[R_W1:R_W1 + S, 0:H]
    b1 = p_ref[R_B1:R_B1 + 1, 0:H]
    w2 = p_ref[R_W2:R_W2 + H, 0:H]
    b2 = p_ref[R_B2:R_B2 + 1, 0:H]
    w3m = p_ref[R_W3M:R_W3M + H, :]              # (H, 128); lanes >= A are zero
    w3s = p_ref[R_W3S:R_W3S + H, :]
    b3m = p_ref[R_B3M:R_B3M + 1, :]
    b3s = p_ref[R_B3S:R_B3S + 1, :]

    # --- MLPNetwork: Linear -> ReLU -> Linear -> ReLU -> Linear (MXU) ---
    h1 = jnp.maximum(jnp.dot(x, w1, preferred_element_type=jnp.float32) + b1, 0.0)
    h2 = jnp.maximum(jnp.dot(h1, w2, preferred_element_type=jnp.float32) + b2, 0.0)

    # mu / logstd from two lane-0-aligned weight slabs (replaces chunk(2, dim=1);
    # no slice at lane offset A). Padded lanes: mu=0, logstd=0, eps=0.
    mu = jnp.dot(h2, w3m, preferred_element_type=jnp.float32) + b3m         # (B, 128)
    logstd = jnp.dot(h2, w3s, preferred_element_type=jnp.float32) + b3s     # (B, 128)
    logstd = jnp.clip(logstd, -20.0, 2.0)
    std = jnp.exp(logstd)

    # --- TransformedDistribution(Normal(mu, std), [TanhTransform]).rsample() ---
    pre = mu + std * eps                         # padded lanes stay 0
    action = jnp.tanh(pre)
    mean = jnp.tanh(mu)

    # --- log_prob(action).sum(axis=-1, keepdim=True) ---
    # base Normal log-prob at pre: -0.5*eps^2 - logstd - 0.5*log(2*pi)
    base_lp = -0.5 * eps * eps - logstd - _LOG_SQRT_2PI
    # tanh log|det J| = 2*(log 2 - x - softplus(-2x))
    ladj = 2.0 * (_LOG_2 - pre - jnp.logaddexp(-2.0 * pre, 0.0))
    lane = jax.lax.broadcasted_iota(jnp.int32, (B, LANE), 1)
    lp = jnp.where(lane < A, base_lp - ladj, 0.0)
    logprob = jnp.sum(lp, axis=-1, keepdims=True)                            # (B, 1)

    # --- single lane-dense output slab: full-width 128-lane stores ---
    out_ref[0:B, :] = action * MAX_ACTION
    out_ref[B:2 * B, :] = mean * MAX_ACTION
    out_ref[2 * B:3 * B, :] = jnp.broadcast_to(logprob, (B, LANE))


def pack_params(params):
    """Pack all weights/biases into one lane-dense (PARAM_ROWS, 128) f32 slab (do once)."""
    w1, b1, w2, b2, w3, b3 = params
    A = ACTION_DIM
    p = jnp.zeros((PARAM_ROWS, LANE), jnp.float32)
    p = p.at[R_W1:R_W1 + STATE_DIM, 0:HIDDEN].set(w1)
    p = p.at[R_B1:R_B1 + 1, 0:HIDDEN].set(b1)
    p = p.at[R_W2:R_W2 + HIDDEN, 0:HIDDEN].set(w2)
    p = p.at[R_B2:R_B2 + 1, 0:HIDDEN].set(b2)
    p = p.at[R_W3M:R_W3M + HIDDEN, 0:A].set(w3[:, :A])
    p = p.at[R_W3S:R_W3S + HIDDEN, 0:A].set(w3[:, A:])
    p = p.at[R_B3M:R_B3M + 1, 0:A].set(b3[:, :A])
    p = p.at[R_B3S:R_B3S + 1, 0:A].set(b3[:, A:])
    return p


@jax.jit
def policy_forward(x, packed_params, eps):
    B = x.shape[0]

    # Pack x and eps into one lane-dense input slab (2 input DMAs total).
    data = jnp.zeros((2 * B, LANE), jnp.float32)
    data = data.at[0:B, 0:STATE_DIM].set(x)
    data = data.at[B:2 * B, 0:ACTION_DIM].set(eps)

    full = lambda shape: pl.BlockSpec(shape, lambda: (0, 0))

    out = pl.pallas_call(
        policy_kernel,
        out_shape=jax.ShapeDtypeStruct((3 * B, LANE), jnp.float32),
        grid=(),
        in_specs=[full((2 * B, LANE)), full((PARAM_ROWS, LANE))],
        out_specs=full((3 * B, LANE)),
        cost_estimate=pl.CostEstimate(
            flops=180_000, transcendentals=6_144, bytes_accessed=94_208),
    )(data, packed_params)

    action = out[0:B, 0:ACTION_DIM]
    mean = out[B:2 * B, 0:ACTION_DIM]
    logprob = out[2 * B:3 * B, 0:1]
    return action, logprob, mean


def init_params(key, state_dim, action_dim, hidden):
    """Deterministic init mimicking nn.Linear default (uniform +-1/sqrt(fan_in))."""
    ks = jax.random.split(key, 6)

    def lin(kw, kb, fan_in, fan_out):
        bound = 1.0 / math.sqrt(fan_in)
        w = jax.random.uniform(kw, (fan_in, fan_out), jnp.float32, -bound, bound)
        b = jax.random.uniform(kb, (1, fan_out), jnp.float32, -bound, bound)
        return w, b

    w1, b1 = lin(ks[0], ks[1], state_dim, hidden)
    w2, b2 = lin(ks[2], ks[3], hidden, hidden)
    w3, b3 = lin(ks[4], ks[5], hidden, 2 * action_dim)
    return (w1, b1, w2, b2, w3, b3)


def policy_reference(x, params, eps):
    """Pure-JAX reference for verification."""
    w1, b1, w2, b2, w3, b3 = params
    h1 = jnp.maximum(x @ w1 + b1, 0.0)
    h2 = jnp.maximum(h1 @ w2 + b2, 0.0)
    out = h2 @ w3 + b3
    A = out.shape[1] // 2
    mu, logstd = out[:, :A], out[:, A:]
    logstd = jnp.clip(logstd, -20.0, 2.0)
    std = jnp.exp(logstd)
    pre = mu + std * eps
    action = jnp.tanh(pre)
    base_lp = -0.5 * eps * eps - logstd - 0.5 * math.log(2.0 * math.pi)
    ladj = 2.0 * (math.log(2.0) - pre - jnp.logaddexp(-2.0 * pre, 0.0))
    logprob = jnp.sum(base_lp - ladj, axis=-1, keepdims=True)
    mean = jnp.tanh(mu)
    return action * MAX_ACTION, logprob, mean * MAX_ACTION


if __name__ == "__main__":
    key = jax.random.PRNGKey(0)
    k_param, k_x, k_eps = jax.random.split(key, 3)

    params = init_params(k_param, STATE_DIM, ACTION_DIM, HIDDEN)
    packed = pack_params(params)
    x = jax.random.normal(k_x, (BATCH, STATE_DIM), jnp.float32)
    eps = jax.random.normal(k_eps, (BATCH, ACTION_DIM), jnp.float32)

    action, logprob, mean = policy_forward(x, packed, eps)
    jax.block_until_ready((action, logprob, mean))

    ra, rl, rm = policy_reference(x, params, eps)
    assert jnp.allclose(action, ra, atol=1e-5, rtol=1e-5)
    assert jnp.allclose(logprob, rl, atol=1e-5, rtol=1e-5)
    assert jnp.allclose(mean, rm, atol=1e-5, rtol=1e-5)

    print("KERNEL_OK")
</pallas_src>

<mosaic_0001>
module attributes {stable_mosaic.version = 11 : i64} {
  func.func @policy_kernel(%arg0: memref<16x128xf32, #tpu.memory_space<vmem>>, %arg1: memref<144x128xf32, #tpu.memory_space<vmem>>, %arg2: memref<24x128xf32, #tpu.memory_space<vmem>>) attributes {dimension_semantics = [], scalar_prefetch = 0 : i64, scratch_operands = 0 : i64, tpu.core_type = #tpu.core_type<tc>} {
    %c0 = arith.constant 0 : index
    %c0_0 = arith.constant 0 : index
    %0 = vector.load %arg0[%c0, %c0_0] : memref<16x128xf32, #tpu.memory_space<vmem>>, vector<8x16xf32>
    %c8 = arith.constant 8 : index
    %c0_1 = arith.constant 0 : index
    %1 = vector.load %arg0[%c8, %c0_1] : memref<16x128xf32, #tpu.memory_space<vmem>>, vector<8x128xf32>
    %c0_2 = arith.constant 0 : index
    %c0_3 = arith.constant 0 : index
    %2 = vector.load %arg1[%c0_2, %c0_3] : memref<144x128xf32, #tpu.memory_space<vmem>>, vector<16x32xf32>
    %c16 = arith.constant 16 : index
    %c0_4 = arith.constant 0 : index
    %3 = vector.load %arg1[%c16, %c0_4] : memref<144x128xf32, #tpu.memory_space<vmem>>, vector<1x32xf32>
    %c24 = arith.constant 24 : index
    %c0_5 = arith.constant 0 : index
    %4 = vector.load %arg1[%c24, %c0_5] : memref<144x128xf32, #tpu.memory_space<vmem>>, vector<32x32xf32>
    %c56 = arith.constant 56 : index
    %c0_6 = arith.constant 0 : index
    %5 = vector.load %arg1[%c56, %c0_6] : memref<144x128xf32, #tpu.memory_space<vmem>>, vector<1x32xf32>
    %c64 = arith.constant 64 : index
    %c0_7 = arith.constant 0 : index
    %6 = vector.load %arg1[%c64, %c0_7] : memref<144x128xf32, #tpu.memory_space<vmem>>, vector<32x128xf32>
    %c96 = arith.constant 96 : index
    %c0_8 = arith.constant 0 : index
    %7 = vector.load %arg1[%c96, %c0_8] : memref<144x128xf32, #tpu.memory_space<vmem>>, vector<32x128xf32>
    %c128 = arith.constant 128 : index
    %c0_9 = arith.constant 0 : index
    %8 = vector.load %arg1[%c128, %c0_9] : memref<144x128xf32, #tpu.memory_space<vmem>>, vector<1x128xf32>
    %c136 = arith.constant 136 : index
    %c0_10 = arith.constant 0 : index
    %9 = vector.load %arg1[%c136, %c0_10] : memref<144x128xf32, #tpu.memory_space<vmem>>, vector<1x128xf32>
    %cst = arith.constant dense<0.000000e+00> : vector<8x32xf32>
    %10 = tpu.matmul %0, %2, %cst {dimension_numbers = #tpu.dot_dimension_numbers<[1], [0], [0], [1], [0, 0, 1, 1], [], []>} : vector<8x16xf32>, vector<16x32xf32>, vector<8x32xf32> -> vector<8x32xf32>
    %11 = vector.broadcast %3 : vector<1x32xf32> to vector<8x32xf32>
    %12 = arith.addf %10, %11 : vector<8x32xf32>
    %cst_11 = arith.constant 0.000000e+00 : f32
    %13 = vector.broadcast %cst_11 : f32 to vector<8x32xf32>
    %14 = arith.maximumf %12, %13 : vector<8x32xf32>
    %cst_12 = arith.constant dense<0.000000e+00> : vector<8x32xf32>
    %15 = tpu.matmul %14, %4, %cst_12 {dimension_numbers = #tpu.dot_dimension_numbers<[1], [0], [0], [1], [0, 0, 1, 1], [], []>} : vector<8x32xf32>, vector<32x32xf32>, vector<8x32xf32> -> vector<8x32xf32>
    %16 = vector.broadcast %5 : vector<1x32xf32> to vector<8x32xf32>
    %17 = arith.addf %15, %16 : vector<8x32xf32>
    %cst_13 = arith.constant 0.000000e+00 : f32
    %18 = vector.broadcast %cst_13 : f32 to vector<8x32xf32>
    %19 = arith.maximumf %17, %18 : vector<8x32xf32>
    %cst_14 = arith.constant dense<0.000000e+00> : vector<8x128xf32>
    %20 = tpu.matmul %19, %6, %cst_14 {dimension_numbers = #tpu.dot_dimension_numbers<[1], [0], [0], [1], [0, 0, 1, 1], [], []>} : vector<8x32xf32>, vector<32x128xf32>, vector<8x128xf32> -> vector<8x128xf32>
    %21 = vector.broadcast %8 : vector<1x128xf32> to vector<8x128xf32>
    %22 = arith.addf %20, %21 : vector<8x128xf32>
    %cst_15 = arith.constant dense<0.000000e+00> : vector<8x128xf32>
    %23 = tpu.matmul %19, %7, %cst_15 {dimension_numbers = #tpu.dot_dimension_numbers<[1], [0], [0], [1], [0, 0, 1, 1], [], []>} : vector<8x32xf32>, vector<32x128xf32>, vector<8x128xf32> -> vector<8x128xf32>
    %24 = vector.broadcast %9 : vector<1x128xf32> to vector<8x128xf32>
    %25 = arith.addf %23, %24 : vector<8x128xf32>
    %cst_16 = arith.constant -2.000000e+01 : f32
    %cst_17 = arith.constant 2.000000e+00 : f32
    %26 = vector.broadcast %cst_16 : f32 to vector<8x128xf32>
    %27 = arith.maximumf %26, %25 : vector<8x128xf32>
    %28 = vector.broadcast %cst_17 : f32 to vector<8x128xf32>
    %29 = arith.minimumf %28, %27 : vector<8x128xf32>
    %30 = math.exp %29 : vector<8x128xf32>
    %31 = arith.mulf %30, %1 : vector<8x128xf32>
    %32 = arith.addf %22, %31 : vector<8x128xf32>
    %33 = math.tanh %32 : vector<8x128xf32>
    %34 = math.tanh %22 : vector<8x128xf32>
    %cst_18 = arith.constant -5.000000e-01 : f32
    %35 = vector.broadcast %cst_18 : f32 to vector<8x128xf32>
    %36 = arith.mulf %35, %1 : vector<8x128xf32>
    %37 = arith.mulf %36, %1 : vector<8x128xf32>
    %38 = arith.subf %37, %29 : vector<8x128xf32>
    %cst_19 = arith.constant 0.918938517 : f32
    %39 = vector.broadcast %cst_19 : f32 to vector<8x128xf32>
    %40 = arith.subf %38, %39 : vector<8x128xf32>
    %cst_20 = arith.constant 0.693147182 : f32
    %41 = vector.broadcast %cst_20 : f32 to vector<8x128xf32>
    %42 = arith.subf %41, %32 : vector<8x128xf32>
    %cst_21 = arith.constant -2.000000e+00 : f32
    %43 = vector.broadcast %cst_21 : f32 to vector<8x128xf32>
    %44 = arith.mulf %43, %32 : vector<8x128xf32>
    %cst_22 = arith.constant 0.000000e+00 : f32
    %45 = vector.broadcast %cst_22 : f32 to vector<8x128xf32>
    %46 = arith.maximumf %44, %45 : vector<8x128xf32>
    %47 = vector.broadcast %cst_22 : f32 to vector<8x128xf32>
    %48 = arith.subf %44, %47 : vector<8x128xf32>
    %49 = arith.cmpf one, %48, %48 : vector<8x128xf32>
    %50 = vector.broadcast %cst_22 : f32 to vector<8x128xf32>
    %51 = arith.addf %44, %50 : vector<8x128xf32>
    %52 = math.absf %48 : vector<8x128xf32>
    %cst_23 = arith.constant 0.000000e+00 : f32
    %53 = vector.broadcast %cst_23 : f32 to vector<8x128xf32>
    %54 = arith.subf %53, %52 : vector<8x128xf32>
    %55 = math.exp %54 : vector<8x128xf32>
    %56 = math.log1p %55 : vector<8x128xf32>
    %57 = arith.addf %46, %56 : vector<8x128xf32>
    %58 = arith.select %49, %51, %57 : vector<8x128xi1>, vector<8x128xf32>
    %59 = arith.subf %42, %58 : vector<8x128xf32>
    %cst_24 = arith.constant 2.000000e+00 : f32
    %60 = vector.broadcast %cst_24 : f32 to vector<8x128xf32>
    %61 = arith.mulf %60, %59 : vector<8x128xf32>
    %62 = tpu.iota {dimensions = array<i32: 1>} : vector<8x128xi32>
    %c4_i32 = arith.constant 4 : i32
    %63 = vector.broadcast %c4_i32 : i32 to vector<8x128xi32>
    %64 = arith.cmpi slt, %62, %63 : vector<8x128xi32>
    %65 = arith.subf %40, %61 : vector<8x128xf32>
    %cst_25 = arith.constant 0.000000e+00 : f32
    %66 = vector.broadcast %cst_25 : f32 to vector<8x128xf32>
    %67 = arith.select %64, %65, %66 : vector<8x128xi1>, vector<8x128xf32>
    %cst_26 = arith.constant dense<0.000000e+00> : vector<8xf32>
    %68 = vector.multi_reduction <add>, %67, %cst_26 [1] : vector<8x128xf32> to vector<8xf32>
    %69 = vector.shape_cast %68 : vector<8xf32> to vector<8x1xf32>
    %cst_27 = arith.constant 2.000000e+00 : f32
    %70 = vector.broadcast %cst_27 : f32 to vector<8x128xf32>
    %71 = arith.mulf %33, %70 : vector<8x128xf32>
    %c0_28 = arith.constant 0 : index
    %c0_29 = arith.constant 0 : index
    %72 = vector.load %arg2[%c0_28, %c0_29] : memref<24x128xf32, #tpu.memory_space<vmem>>, vector<8x128xf32>
    tpu.vector_store %arg2[%c0_28, %c0_29], %71 {strides = array<i32>} : memref<24x128xf32, #tpu.memory_space<vmem>>, vector<8x128xf32>,
    %cst_30 = arith.constant 2.000000e+00 : f32
    %73 = vector.broadcast %cst_30 : f32 to vector<8x128xf32>
    %74 = arith.mulf %34, %73 : vector<8x128xf32>
    %c8_31 = arith.constant 8 : index
    %c0_32 = arith.constant 0 : index
    %75 = vector.load %arg2[%c8_31, %c0_32] : memref<24x128xf32, #tpu.memory_space<vmem>>, vector<8x128xf32>
    tpu.vector_store %arg2[%c8_31, %c0_32], %74 {strides = array<i32>} : memref<24x128xf32, #tpu.memory_space<vmem>>, vector<8x128xf32>,
    %76 = vector.shape_cast %69 : vector<8x1xf32> to vector<8x1xf32>
    %77 = vector.broadcast %76 : vector<8x1xf32> to vector<8x128xf32>
    %c16_33 = arith.constant 16 : index
    %c0_34 = arith.constant 0 : index
    %78 = vector.load %arg2[%c16_33, %c0_34] : memref<24x128xf32, #tpu.memory_space<vmem>>, vector<8x128xf32>
    tpu.vector_store %arg2[%c16_33, %c0_34], %77 {strides = array<i32>} : memref<24x128xf32, #tpu.memory_space<vmem>>, vector<8x128xf32>,
    return
  }
}

</mosaic_0001>

<bundles_post_ra>
// kernel: policy_forward.1
= control target key start
LH: loop header
LB: loop body
LE: loop exit
PB: predicated region body
PF: predicated region fallthrough
CT: control target
= control target key end

     0   :  { %7 = vsyncpa [#allocation3], 0  ;;  %s533_s9 = smov [#allocation2]   ;;  %s588_s0 = inlined_call_operand.vmem [shape: f32[16,128], index: 0, kind: input, shape index: {}]   ;;  %s589_s1 = inlined_call_operand.hbm [shape: f32[144,128], index: 1, kind: input, shape index: {}]   ;;  %s590_s2 = inlined_call_operand.vmem [shape: f32[24,128], index: 2, kind: output, shape index: {}]  }
   0x1   :  { %s15_s10 = sshll.u32 %s533_s9, 4  ;;  %s509_s13 = scalar_lea.hbm %s589_s1, 2304  ;;  %s16_s10 = int_to_ptr.vmem [resolvable:$true] %s15_s10 }
   0x2   :  { %p510_p0 = scmp.ne.s32.totalorder %s589_s1, %s509_s13  ;;  %p513_p1 = scmp.lt.u32.totalorder %s509_s13, %s589_s1 }
   0x4   :  { %p515_p2 = pnand %p513_p1, %p510_p0 }
   0x6   :  { %518 = shalt.err (!%p515_p2)
}
   0x7   :  { %s519_s18 = scalar_lea.vmem %s16_s10, 2304  ;;  %p524_p4 = scmp.lt.s32.totalorder %s16_s10, %s16_s10 }
   0x8   :  { %p520_p3 = scmp.ne.s32.totalorder %s16_s10, %s519_s18  ;;  %p525_p5 = scmp.lt.s32.totalorder %s519_s18, %s519_s18 }
   0xa   :  { %p526_p6 = por %p525_p5, %p524_p4 }
   0xc   :  { %p527_p7 = pnand %p526_p6, %p520_p3 }
   0xe   :  { %530 = shalt.err (!%p527_p7)
}
   0xf   :  { %s534_s19 = smov 128   ;;  %s535_s20 = smov 8  }
  0x10   :  { %21 = dma.hbm_to_vmem [thread:$0]  %s589_s1, 2304, %s16_s10, [#allocation3], %s534_s19, %s534_s19, %s535_s20  }
  0x11   :  { %531 = dma.done.wait [#allocation3], 2304  }
  0x12   :  { %532 = vsyncadd [#allocation3], 4294964992  ;;  %v536_v0 = vmov 0.0|0.0   ;;  %vm537_vm0 = vmmov 0   ;;  %v538_v1 = vmov 0.0   ;;  %v27_v2 = vld [vmem:[#allocation2] sm:$0xff] }
  0x13   :  { %472 = vmatprep.subr.bf16.mxu0 %v536_v0  ;;  %436 = vmatprep.mubr.msk.f32.mxu0 %vm537_vm0, %v538_v1  ;;  %v28_v3 = vld [vmem:[#allocation2 + $0x8] sm:$0xff]  ;;  %v30_v5 = vld [vmem:[#allocation2 + $0x18] sm:$0xff]  ;;  %v31_v6 = vld [vmem:[#allocation2 + $0x20] sm:$0xff]  ;;  %vm49_vm1 = vcmask 130048   ;;  %vm128_vm2 = vcmask 261120  }
  0x14   :  { %475 = vmatprep.subr.bf16.mxu1 %v536_v0  ;;  %447 = vmatprep.mubr.msk.f32.mxu1 %vm537_vm0, %v538_v1  ;;  %v473_v4 = vpack.c.bf16 %v28_v3, %v27_v2  ;;  %v476_v7 = vpack.c.bf16 %v31_v6, %v30_v5  ;;  %v25_v8 = vld [vmem:[%s588_s0] sm:$0xff]  ;;  %v32_v9 = vld [vmem:[#allocation2 + $0x28] sm:$0xff]  ;;  %v33_v10 = vld [vmem:[#allocation2 + $0x30] sm:$0xff] }
  0x15   :  { %v479_v11 = vpack.c.bf16 %v33_v10, %v32_v9  ;;  %v35_v12 = vld [vmem:[#allocation2 + $0x40] sm:$0xff]  ;;  %v36_v13 = vld [vmem:[#allocation2 + $0x48] sm:$0xff]  ;;  %v405_v15 = vld [vmem:[#allocation2 + $0x10] ss:$0 sm:$0xff] }
  0x16   :  { %474 = vmatpush3.bf16.msra.mxu0 %v473_v4  ;;  %477 = vmatpush3.bf16.msra.mxu1 %v476_v7  ;;  %v482_v14 = vpack.c.bf16 %v36_v13, %v35_v12  ;;  %v39_v16 = vld [vmem:[#allocation2 + $0x60] sm:$0xff]  ;;  %v40_v17 = vld [vmem:[#allocation2 + $0x68] sm:$0xff]  ;;  %v37_v23 = vld [vmem:[#allocation2 + $0x50] sm:$0xff]  ;;  %v388_v4 = vlaneseq }
  0x17   :  { %481 = vmatprep.subr.bf16.mxu0 %v536_v0  ;;  %478 = vmatprep.subr.bf16.mxu1 %v536_v0  ;;  %v488_v21 = vpack.c.bf16 %v40_v17, %v39_v16  ;;  %v38_v24 = vld [vmem:[#allocation2 + $0x58] sm:$0xff]  ;;  %v41_v25 = vld [vmem:[#allocation2 + $0x70] sm:$0xff]  ;;  %v409_v34 = vld [vmem:[#allocation2 + $0x80] ss:$0 sm:$0xff] }
  0x18   :  { %v485_v26 = vpack.c.bf16 %v38_v24, %v37_v23  ;;  %v42_v27 = vld [vmem:[#allocation2 + $0x78] sm:$0xff]  ;;  %v411_v35 = vld [vmem:[#allocation2 + $0x88] ss:$0 sm:$0xff]  ;;  %v389_v10 = vand.u32 127, %v388_v4 }
  0x19   :  { %437 = vmatmul.mubr.msk.f32.vlgmr.msra.gmra.mrb[0].mxu0 %vm49_vm1, %v25_v8  ;;  %v491_v28 = vpack.c.bf16 %v42_v27, %v41_v25  ;;  %v407_v29 = vld [vmem:[#allocation2 + $0x38] ss:$0 sm:$0xff]  ;;  %v26_v48 = vld [vmem:[%s588_s0 + $0x8] sm:$0xff] }
  0x1a   :  { %458 = vmatprep.mubr.msk.f32.mxu0 %vm537_vm0, %v538_v1  ;;  %480 = vmatpush3.bf16.msra.mxu1 %v479_v11  ;;  %v362_v60 = vmul.f32 -0.5, %v26_v48  ;;  %vm390_vm5 = vcmp.lt.s32.totalorder %v389_v10, 4 }
  0x1b   :  { %487 = vmatprep.subr.bf16.mxu1 %v536_v0  ;;  %483 = vmatpush3.bf16.msra.mxu0 %v482_v14 }
  0x1c   :  { %484 = vmatprep.subr.bf16.mxu0 %v536_v0 }
  0x1f   :  { %486 = vmatpush3.bf16.msra.mxu0 %v485_v26 }
  0xec   :  { %v119_v18 = vpop.f32.mrb[0].mxu0 }
  0xed   :  { %v120_v19 = vadd.f32 %v405_v15, %v119_v18  ;;  %v438_v20 = vpop.f32.mrb[1].mxu0 }
  0xef   :  { %v123_v22 = vmax.f32 %v120_v19, 0.0 }
  0xf1   :  { %448 = vmatmul.mubr.msk.f32.vlgmr.msra.gmra.mrb[0].mxu1 %vm128_vm2, %v123_v22 }
  0xf2   :  { %489 = vmatpush3.bf16.msra.mxu1 %v488_v21  ;;  %469 = vmatprep.mubr.msk.f32.mxu1 %vm537_vm0, %v538_v1 }
  0xf3   :  { %490 = vmatprep.subr.bf16.mxu1 %v536_v0  ;;  %v363_v0 = vmul.f32 %v362_v60, %v26_v48 }
  0xf6   :  { %492 = vmatpush3.bf16.msra.mxu1 %v491_v28 }
 0x1c4   :  { %v198_v30 = vpop.f32.mrb[0].mxu1 }
 0x1c5   :  { %v199_v31 = vadd.f32 %v407_v29, %v198_v30  ;;  %v449_v32 = vpop.f32.mrb[1].mxu1 }
 0x1c7   :  { %v202_v33 = vmax.f32 %v199_v31, 0.0 }
 0x1c9   :  { %459 = vmatmul.mubr.msk.f32.vlgmr.msra.gmra.mrb[2].mxu0 %vm128_vm2, %v202_v33  ;;  %470 = vmatmul.mubr.msk.f32.vlgmr.msra.gmra.mrb[2].mxu1 %vm128_vm2, %v202_v33 }
 0x29c   :  { %v276_v36 = vpop.f32.mrb[2].mxu0  ;;  %v350_v37 = vpop.f32.mrb[2].mxu1 }
 0x29d   :  { %v277_v38 = vadd.f32 %v409_v34, %v276_v36  ;;  %v351_v39 = vadd.f32 %v411_v35, %v350_v37  ;;  %v460_v40 = vpop.f32.mrb[3].mxu0  ;;  %v471_v41 = vpop.f32.mrb[3].mxu1 }
 0x29f   :  { %499 = vtanh.f32 %v277_v38  ;;  %v354_v42 = vmax.f32 %v351_v39, -20.0 }
 0x2a1   :  { %v355_v43 = vmin.f32 %v354_v42, 2.0 }
 0x2a3   :  { %v356_v44 = vmul.f32 1.442695, %v355_v43  ;;  %v364_v7 = vsub.f32 %v363_v0, %v355_v43 }
 0x2a5   :  { %501 = vpow2.f32 %v356_v44  ;;  %v413_v12 = vadd.f32 -0.9189385, %v364_v7 }
 0x2a9   :  { %v500_v45 = vpop.eup %499 }
 0x2aa   :  { %v397_v46 = vmul.f32 2.0, %v500_v45 }
 0x2ac   :  { %398 = vst [vmem:[%s590_s2 + $0x8] sm:$0xff] %v397_v46 }
 0x2af   :  { %v502_v47 = vpop.eup %501 }
 0x2b0   :  { %v358_v49 = vmul.f32 %v502_v47, %v26_v48 }
 0x2b2   :  { %v359_v50 = vadd.f32 %v358_v49, %v277_v38 }
 0x2b4   :  { %503 = vtanh.f32 %v359_v50  ;;  %v367_v51 = vmul.f32 -2.0, %v359_v50  ;;  %v366_v8 = vsub.f32 0.6931472, %v359_v50 }
 0x2b6   :  { %v371_v52 = vand.u32 2147483647, %v367_v51  ;;  %v368_v3 = vmax.f32 %v367_v51, 0.0  ;;  %vm369_vm4 = vcmp.ne.f32.partialorder %v367_v51, %v367_v51 }
 0x2b8   :  { %v372_v53 = vsub.f32 0.0, %v371_v52 }
 0x2ba   :  { %v373_v54 = vmul.f32 1.442695, %v372_v53 }
 0x2bc   :  { %505 = vpow2.f32 %v373_v54 }
 0x2be   :  { %v504_v55 = vpop.eup %503 }
 0x2bf   :  { %v395_v56 = vmul.f32 2.0, %v504_v55 }
 0x2c1   :  { %396 = vst [vmem:[%s590_s2] sm:$0xff] %v395_v56 }
 0x2c6   :  { %v506_v57 = vpop.eup %505 }
 0x2c7   :  { %v375_v58 = vadd.f32 1.0, %v506_v57  ;;  %v378_v59 = vmul.f32 -0.5, %v506_v57  ;;  %v381_v62 = vand.u32 2147483647, %v506_v57 }
 0x2c9   :  { %507 = vlog2.f32 %v375_v58  ;;  %v379_v61 = vadd.f32 1.0, %v378_v59  ;;  %vm382_vm3 = vcmp.lt.f32.partialorder %v381_v62, 0.0004427343 }
 0x2cb   :  { %v380_v2 = vmul.f32 %v506_v57, %v379_v61 }
 0x2d3   :  { %v508_v63 = vpop.eup %507 }
 0x2d4   :  { %v377_v1 = vmul.f32 0.6931472, %v508_v63 }
 0x2d6   :  { %v383_v5 = vsel %vm382_vm3, %v380_v2, %v377_v1 }
 0x2d7   :  { %v384_v6 = vadd.f32 %v383_v5, %v368_v3 }
 0x2d9   :  { %v385_v9 = vsel %vm369_vm4, %v367_v51, %v384_v6 }
 0x2da   :  { %v386_v11 = vsub.f32 %v366_v8, %v385_v9 }
 0x2dc   :  { %v387_v13 = vmul.f32 2.0, %v386_v11 }
 0x2de   :  { %v391_v14 = vsub.f32 %v413_v12, %v387_v13 }
 0x2e0   :  { %v392_v15 = vsel %vm390_vm5, %v391_v14, 0.0 }
 0x2e1   :  { %393 = vadd.xlane.f32.xlu0 %v392_v15 }
 0x36e   :  { %v394_v16 = vpop.xlane.xlu0 %393 }
 0x36f   :  { %399 = vst [vmem:[%s590_s2 + $0x10] sm:$0xff] %v394_v16 }
 0x370   :  { %404 = vsyncpa [#allocation3], 1 }

</bundles_post_ra>
